<compile_context>
chip_gen: v7x
topology: tpu7x:2x2x1
jax: 0.10.0
libtpu: 0.0.40
codegen_flags: <defaults>
</compile_context>

<pallas_src>
import functools

import jax
import jax.numpy as jnp
from jax.experimental import pallas as pl
from jax.experimental.pallas import tpu as pltpu


_EPS = 1e-8                    # torch.nn.CosineSimilarity default eps
_PAD_LABEL_1 = -(2**31 - 1)    # sentinels for zero-padded rows; never equal to
_PAD_LABEL_2 = -(2**31 - 2)    # each other or to any realistic class id


def _round_up(x, m):
    return ((x + m - 1) // m) * m


def _pad_axis(x, axis, target, value=0):
    pad = target - x.shape[axis]
    if pad <= 0:
        return x
    widths = [(0, 0)] * x.ndim
    widths[axis] = (0, pad)
    return jnp.pad(x, widths, constant_values=value)


def _sublane_pack(dtype):
    # Native sublane packing: 8 rows for 4-byte, 16 for 2-byte, 32 for 1-byte.
    return {4: 8, 2: 16, 1: 32}.get(jnp.dtype(dtype).itemsize, 8)


def _vmem_capacity_bytes():
    try:
        return int(pltpu.get_tpu_info().vmem_capacity_bytes)
    except Exception:
        return 64 << 20        # conservative: assume the smallest (v7x) VMEM


def _epilogue(dots, inv1, inv2, l1, l2, out_ref, delta):
    # Inverse norms were hoisted to the wrapper: two broadcast multiplies on
    # the VPU replace the outer product + max(.., eps) + divide of the old
    # epilogue (small-D cases are epilogue-bound, not MXU-bound).
    cos = (dots * inv1) * inv2                                   # [TM, TN]
    same = l1 == l2                                              # [TM, TN]
    hinge = jnp.maximum(jnp.float32(delta) - cos, jnp.float32(0.0))
    loss = jnp.where(same, hinge, cos)
    # Lane-dense partial sums: reduce only the sublane (row) axis and write a
    # full TN-wide row per tile -> unmasked stores, both (i, j) axes stay
    # 'parallel'; the final tiny reduction happens in the JAX wrapper.
    out_ref[...] = jnp.sum(loss, axis=0, keepdims=True).reshape(1, 1, -1)


def _ci_kernel(m1_ref, m2t_ref, in1_ref, in2_ref, l1_ref, l2_ref, out_ref,
               *, delta):
    # Full-D contraction in one step: plain (TM, K) x (K, TN) MXU feed, native
    # dtype inputs (bf16 fast path), f32 accumulation.
    dots = jnp.dot(m1_ref[...], m2t_ref[...],
                   preferred_element_type=jnp.float32)           # [TM, TN]
    _epilogue(dots, in1_ref[...], in2_ref[...], l1_ref[...], l2_ref[...],
              out_ref, delta)


def _ci_kernel_ktiled(m1_ref, m2t_ref, in1_ref, in2_ref, l1_ref, l2_ref,
                      out_ref, acc_ref, *, delta):
    # K-tiled variant (large D / small VMEM): accumulate partial dots in an
    # f32 scratch, run the epilogue once per (i, j) tile on the last K step.
    k = pl.program_id(2)

    @pl.when(k == 0)
    def _():
        acc_ref[...] = jnp.zeros_like(acc_ref)

    acc_ref[...] += jnp.dot(m1_ref[...], m2t_ref[...],
                            preferred_element_type=jnp.float32)

    @pl.when(k == pl.num_programs(2) - 1)
    def _():
        _epilogue(acc_ref[...], in1_ref[...], in2_ref[...], l1_ref[...],
                  l2_ref[...], out_ref, delta)


def class_invariant(mmd1, mmd2, label1, label2, delta=1.0, *,
                    tm=None, tn=None, tk=None):
    """Pallas implementation of classInvariant.forward.

    mmd1: [N1, D] float, mmd2: [N2, D] float, label1: [N1] int, label2: [N2] int.
    Returns a float32 scalar.
    """
    N1, D = mmd1.shape
    N2, D2 = mmd2.shape
    assert D == D2
    num = N1 * N2
    # TODO(synk): the num == 0 branch (empty batch -> uninitialized
    # FloatTensor(1)) is not reproduced; callers must pass non-empty inputs.

    f32 = jnp.float32
    b1 = jnp.dtype(mmd1.dtype).itemsize
    b2 = jnp.dtype(mmd2.dtype).itemsize
    pack1 = _sublane_pack(mmd1.dtype)

    # Generation-aware VMEM budget: ~100 MiB on 128-MiB chips (v5e/v6e),
    # 48 MiB on 64-MiB chips (v7x) / unknown.
    cap = _vmem_capacity_bytes()
    vmem_limit = (100 << 20) if cap >= (128 << 20) else (48 << 20)

    # D padded to a lane multiple once in HBM -> unmasked loads and MXU feed.
    d_pad = _round_up(D, 128)

    # Tile sizes: big stationary tiles cut mmd2 re-streaming (HBM traffic is
    # ~N1*D + ceil(N1/tm)*N2*D); tm aligned to the dtype's sublane packing.
    # NOTE(megacore): when g1 collapses to 1 the compiler shards along j,
    # which keeps aggregate mmd2 reads at N2*D -- still fine for v7x.
    tm = 512 if tm is None else tm
    tn = 512 if tn is None else tn
    tm = max(pack1, min(_round_up(tm, pack1), _round_up(N1, pack1)))
    tn = max(128, min(_round_up(tn, 128), _round_up(N2, 128)))

    def _vmem_bytes(tm_, tn_, tk_):
        blocks = 2 * (tm_ * tk_ * b1           # mmd1 block (double-buffered)
                      + tk_ * tn_ * b2         # mmd2^T block
                      + 2 * tm_ * 128 * 4      # (tm,1) inv-norm+label, lane-padded
                      + 2 * 8 * tn_ * 4        # (1,tn) inv-norm+label, sublane-padded
                      + 8 * tn_ * 4)           # (1,1,tn) output block
        acc = tm_ * tn_ * 4                    # f32 accumulator scratch
        temps = 6 * tm_ * tn_ * 4              # live [tm,tn] f32/i32 temporaries
        return blocks + acc + temps

    if tk is None:
        gk_try = 1
        tk = d_pad
        # Shrink the K tile (enable K-tiling) only when full-D tiles bust VMEM.
        while _vmem_bytes(tm, tn, tk) > vmem_limit and tk > 128:
            gk_try += 1
            tk = max(128, _round_up(-(-d_pad // gk_try), 128))
        # Pathological cases: shrink tn, then tm.
        while _vmem_bytes(tm, tn, tk) > vmem_limit and tn > 128:
            tn = max(128, _round_up(tn // 2, 128))
        while _vmem_bytes(tm, tn, tk) > vmem_limit and tm > pack1:
            tm = max(pack1, _round_up(tm // 2, pack1))
    else:
        tk = max(128, min(_round_up(tk, 128), d_pad))

    gk = -(-d_pad // tk)
    d_final = gk * tk
    n1_pad = _round_up(N1, tm)
    n2_pad = _round_up(N2, tn)
    g1 = n1_pad // tm
    g2 = n2_pad // tn

    # Per-row inverse norms hoisted out of the (i, j) grid. Clamping each norm
    # at sqrt(eps) makes inv1*inv2 == 1/max(n1*n2, eps) whenever both norms
    # are >= 1e-4 (the torch clamp is inactive there); zero/padded rows keep a
    # finite inverse and contribute exactly 0 because their dots are 0.
    n1 = jnp.sqrt(jnp.sum(mmd1.astype(f32) ** 2, axis=-1, keepdims=True))  # [N1,1]
    n2 = jnp.sqrt(jnp.sum(mmd2.astype(f32) ** 2, axis=-1, keepdims=True))  # [N2,1]
    clamp = jnp.sqrt(f32(_EPS))
    inv1 = 1.0 / jnp.maximum(n1, clamp)
    inv2 = 1.0 / jnp.maximum(n2, clamp)

    # mmd2 transposed ONCE in HBM (cheap O(N2*D) XLA op) -> plain (M,K)x(K,N)
    # contraction in the kernel, no per-tile XLU transpose on any generation.
    m1p = _pad_axis(_pad_axis(mmd1, 1, d_final), 0, n1_pad)              # [N1p, Dp]
    m2tp = _pad_axis(_pad_axis(jnp.transpose(mmd2), 0, d_final), 1, n2_pad)  # [Dp, N2p]
    in1p = _pad_axis(inv1, 0, n1_pad)                                    # [N1p, 1]
    in2p = _pad_axis(inv2.reshape(1, N2), 1, n2_pad)                     # [1, N2p]
    l1p = _pad_axis(label1.astype(jnp.int32).reshape(N1, 1), 0, n1_pad,
                    value=_PAD_LABEL_1)                                  # [N1p, 1]
    l2p = _pad_axis(label2.astype(jnp.int32).reshape(1, N2), 1, n2_pad,
                    value=_PAD_LABEL_2)                                  # [1, N2p]

    if gk == 1:
        kernel = functools.partial(_ci_kernel, delta=float(delta))
        grid_spec = pltpu.PrefetchScalarGridSpec(
            num_scalar_prefetch=0,
            grid=(g1, g2),
            in_specs=[
                pl.BlockSpec((tm, d_final), lambda i, j: (i, 0)),  # mmd1 tile
                pl.BlockSpec((d_final, tn), lambda i, j: (0, j)),  # mmd2^T tile
                pl.BlockSpec((tm, 1), lambda i, j: (i, 0)),        # 1/||mmd1 row||
                pl.BlockSpec((1, tn), lambda i, j: (0, j)),        # 1/||mmd2 row||
                pl.BlockSpec((tm, 1), lambda i, j: (i, 0)),        # label1
                pl.BlockSpec((1, tn), lambda i, j: (0, j)),        # label2
            ],
            out_specs=pl.BlockSpec((1, 1, tn), lambda i, j: (i, 0, j)),
        )
        dims = ("parallel", "parallel")
        m1_streams = 1
    else:
        kernel = functools.partial(_ci_kernel_ktiled, delta=float(delta))
        grid_spec = pltpu.PrefetchScalarGridSpec(
            num_scalar_prefetch=0,
            grid=(g1, g2, gk),
            in_specs=[
                pl.BlockSpec((tm, tk), lambda i, j, k: (i, k)),
                pl.BlockSpec((tk, tn), lambda i, j, k: (k, j)),
                pl.BlockSpec((tm, 1), lambda i, j, k: (i, 0)),
                pl.BlockSpec((1, tn), lambda i, j, k: (0, j)),
                pl.BlockSpec((tm, 1), lambda i, j, k: (i, 0)),
                pl.BlockSpec((1, tn), lambda i, j, k: (0, j)),
            ],
            out_specs=pl.BlockSpec((1, 1, tn), lambda i, j, k: (i, 0, j)),
            scratch_shapes=[pltpu.VMEM((tm, tn), jnp.float32)],
        )
        dims = ("parallel", "parallel", "arbitrary")
        m1_streams = g2

    # Honest HBM-traffic estimate: mmd2 streamed g1 times (and mmd1 g2 times
    # when the K axis is tiled).
    bytes_accessed = int(m1_streams * n1_pad * d_final * b1
                         + g1 * n2_pad * d_final * b2
                         + (n1_pad + n2_pad) * 8
                         + g1 * n2_pad * 4)
    flops = 2 * n1_pad * n2_pad * d_final + 6 * n1_pad * n2_pad

    out = pl.pallas_call(
        kernel,
        out_shape=jax.ShapeDtypeStruct((g1, 1, n2_pad), jnp.float32),
        grid_spec=grid_spec,
        compiler_params=pltpu.CompilerParams(
            dimension_semantics=dims,
            vmem_limit_bytes=int(vmem_limit)),
        cost_estimate=pl.CostEstimate(
            flops=flops, transcendentals=0, bytes_accessed=bytes_accessed),
    )(m1p, m2tp, in1p, in2p, l1p, l2p)

    # Tiny final reduction + normalization by the ORIGINAL pair count.
    return jnp.sum(out) / jnp.float32(num)


def _reference(mmd1, mmd2, label1, label2, delta=1.0):
    """Pure-JAX reference mirroring the PyTorch double loop."""
    eps = 1e-8
    m1 = mmd1.astype(jnp.float32)
    m2 = mmd2.astype(jnp.float32)
    n1 = jnp.sqrt(jnp.sum(m1 * m1, axis=-1, keepdims=True))
    n2 = jnp.sqrt(jnp.sum(m2 * m2, axis=-1, keepdims=True))
    dots = jnp.matmul(m1, m2.T, precision=jax.lax.Precision.HIGHEST)
    cos = dots / jnp.maximum(n1 * n2.T, eps)
    same = label1[:, None] == label2[None, :]
    loss = jnp.where(same, jnp.maximum(delta - cos, 0.0), cos)
    return jnp.sum(loss) / (mmd1.shape[0] * mmd2.shape[0])


if __name__ == "__main__":
    key = jax.random.PRNGKey(0)
    k1, k2, k3, k4 = jax.random.split(key, 4)

    # 1) Small shapes consistent with the module (pairwise batches of features).
    N1, N2, D = 8, 8, 32
    mmd1 = jax.random.normal(k1, (N1, D), dtype=jnp.float32)
    mmd2 = jax.random.normal(k2, (N2, D), dtype=jnp.float32)
    label1 = jax.random.randint(k3, (N1,), 0, 3, dtype=jnp.int32)
    label2 = jax.random.randint(k4, (N2,), 0, 3, dtype=jnp.int32)
    result = jax.block_until_ready(
        class_invariant(mmd1, mmd2, label1, label2, delta=1.0))
    ref = _reference(mmd1, mmd2, label1, label2, delta=1.0)
    assert jnp.allclose(result, ref, atol=1e-5, rtol=1e-5), (result, ref)

    # 2) Non-aligned sizes + multi-tile (i, j) grid: exercises padding,
    #    sentinel labels and the (parallel, parallel) grid.
    k5, k6, k7, k8 = jax.random.split(k1, 4)
    N1b, N2b, Db = 40, 300, 96
    a = jax.random.normal(k5, (N1b, Db), dtype=jnp.float32)
    b = jax.random.normal(k6, (N2b, Db), dtype=jnp.float32)
    la = jax.random.randint(k7, (N1b,), 0, 5, dtype=jnp.int32)
    lb = jax.random.randint(k8, (N2b,), 0, 5, dtype=jnp.int32)
    r2 = jax.block_until_ready(
        class_invariant(a, b, la, lb, delta=1.0, tm=16, tn=128))
    ref2 = _reference(a, b, la, lb, delta=1.0)
    assert jnp.allclose(r2, ref2, atol=1e-4, rtol=1e-4), (r2, ref2)

    # 3) Forced K-tiled path (accumulator scratch + pl.when init/finalize).
    k9, k10, k11, k12 = jax.random.split(k2, 4)
    N1c, N2c, Dc = 64, 256, 384
    c1 = jax.random.normal(k9, (N1c, Dc), dtype=jnp.float32)
    c2 = jax.random.normal(k10, (N2c, Dc), dtype=jnp.float32)
    lc1 = jax.random.randint(k11, (N1c,), 0, 4, dtype=jnp.int32)
    lc2 = jax.random.randint(k12, (N2c,), 0, 4, dtype=jnp.int32)
    r3 = jax.block_until_ready(
        class_invariant(c1, c2, lc1, lc2, delta=1.0, tm=32, tn=128, tk=128))
    ref3 = _reference(c1, c2, lc1, lc2, delta=1.0)
    assert jnp.allclose(r3, ref3, atol=1e-4, rtol=1e-4), (r3, ref3)

    # 4) bf16 fast path with default (large, sublane-packed) tiles.
    k13, k14, k15, k16 = jax.random.split(k3, 4)
    N1d, N2d, Dd = 24, 200, 160
    d1 = jax.random.normal(k13, (N1d, Dd), dtype=jnp.bfloat16)
    d2 = jax.random.normal(k14, (N2d, Dd), dtype=jnp.bfloat16)
    ld1 = jax.random.randint(k15, (N1d,), 0, 4, dtype=jnp.int32)
    ld2 = jax.random.randint(k16, (N2d,), 0, 4, dtype=jnp.int32)
    r4 = jax.block_until_ready(class_invariant(d1, d2, ld1, ld2, delta=1.0))
    ref4 = _reference(d1, d2, ld1, ld2, delta=1.0)
    assert jnp.allclose(r4, ref4, atol=2e-3, rtol=2e-3), (r4, ref4)

    print("KERNEL_OK")
</pallas_src>

<mosaic_0001>
module attributes {stable_mosaic.version = 11 : i64} {
  func.func @_ci_kernel(%arg0: i32, %arg1: i32, %arg2: memref<8x128xf32, #tpu.memory_space<vmem>>, %arg3: memref<128x128xf32, #tpu.memory_space<vmem>>, %arg4: memref<8x1xf32, #tpu.memory_space<vmem>>, %arg5: memref<1x128xf32, #tpu.memory_space<vmem>>, %arg6: memref<8x1xi32, #tpu.memory_space<vmem>>, %arg7: memref<1x128xi32, #tpu.memory_space<vmem>>, %arg8: memref<1x1x128xf32, #tpu.memory_space<vmem>>) attributes {dimension_semantics = [#tpu.dimension_semantics<parallel>, #tpu.dimension_semantics<parallel>], iteration_bounds = array<i64: 1, 1>, scalar_prefetch = 0 : i64, scratch_operands = 0 : i64, tpu.core_type = #tpu.core_type<tc>, window_params = [{transform_indices = @transform_0, window_bounds = array<i64: 8, 128>}, {transform_indices = @transform_1, window_bounds = array<i64: 128, 128>}, {transform_indices = @transform_2, window_bounds = array<i64: 8, 1>}, {transform_indices = @transform_3, window_bounds = array<i64: 1, 128>}, {transform_indices = @transform_4, window_bounds = array<i64: 8, 1>}, {transform_indices = @transform_5, window_bounds = array<i64: 1, 128>}, {transform_indices = @transform_6, window_bounds = array<i64: 1, 1, 128>}]} {
    %c0 = arith.constant 0 : index
    %c0_0 = arith.constant 0 : index
    %0 = vector.load %arg2[%c0, %c0_0] : memref<8x128xf32, #tpu.memory_space<vmem>>, vector<8x128xf32>
    %c0_1 = arith.constant 0 : index
    %c0_2 = arith.constant 0 : index
    %1 = vector.load %arg3[%c0_1, %c0_2] : memref<128x128xf32, #tpu.memory_space<vmem>>, vector<128x128xf32>
    %cst = arith.constant dense<0.000000e+00> : vector<8x128xf32>
    %2 = tpu.matmul %0, %1, %cst {dimension_numbers = #tpu.dot_dimension_numbers<[1], [0], [0], [1], [0, 0, 1, 1], [], []>} : vector<8x128xf32>, vector<128x128xf32>, vector<8x128xf32> -> vector<8x128xf32>
    %c0_3 = arith.constant 0 : index
    %c0_4 = arith.constant 0 : index
    %3 = vector.load %arg4[%c0_3, %c0_4] : memref<8x1xf32, #tpu.memory_space<vmem>>, vector<8x1xf32>
    %c0_5 = arith.constant 0 : index
    %c0_6 = arith.constant 0 : index
    %4 = vector.load %arg5[%c0_5, %c0_6] : memref<1x128xf32, #tpu.memory_space<vmem>>, vector<1x128xf32>
    %c0_7 = arith.constant 0 : index
    %c0_8 = arith.constant 0 : index
    %5 = vector.load %arg6[%c0_7, %c0_8] : memref<8x1xi32, #tpu.memory_space<vmem>>, vector<8x1xi32>
    %c0_9 = arith.constant 0 : index
    %c0_10 = arith.constant 0 : index
    %6 = vector.load %arg7[%c0_9, %c0_10] : memref<1x128xi32, #tpu.memory_space<vmem>>, vector<1x128xi32>
    %7 = vector.broadcast %3 : vector<8x1xf32> to vector<8x128xf32>
    %8 = arith.mulf %2, %7 : vector<8x128xf32>
    %9 = vector.broadcast %4 : vector<1x128xf32> to vector<8x128xf32>
    %10 = arith.mulf %8, %9 : vector<8x128xf32>
    %11 = vector.broadcast %5 : vector<8x1xi32> to vector<8x128xi32>
    %12 = vector.broadcast %6 : vector<1x128xi32> to vector<8x128xi32>
    %13 = arith.cmpi eq, %11, %12 : vector<8x128xi32>
    %cst_11 = arith.constant 1.000000e+00 : f32
    %14 = vector.broadcast %cst_11 : f32 to vector<8x128xf32>
    %15 = arith.subf %14, %10 : vector<8x128xf32>
    %cst_12 = arith.constant 0.000000e+00 : f32
    %16 = vector.broadcast %cst_12 : f32 to vector<8x128xf32>
    %17 = arith.maximumf %15, %16 : vector<8x128xf32>
    %18 = arith.select %13, %17, %10 : vector<8x128xi1>, vector<8x128xf32>
    %cst_13 = arith.constant dense<0.000000e+00> : vector<128xf32>
    %19 = vector.multi_reduction <add>, %18, %cst_13 [0] : vector<8x128xf32> to vector<128xf32>
    %20 = vector.shape_cast %19 : vector<128xf32> to vector<1x128xf32>
    %21 = vector.shape_cast %20 : vector<1x128xf32> to vector<1x1x128xf32>
    %c0_14 = arith.constant 0 : index
    %c0_15 = arith.constant 0 : index
    %c0_16 = arith.constant 0 : index
    %22 = vector.load %arg8[%c0_14, %c0_15, %c0_16] : memref<1x1x128xf32, #tpu.memory_space<vmem>>, vector<1x1x128xf32>
    tpu.vector_store %arg8[%c0_14, %c0_15, %c0_16], %21 {strides = array<i32>} : memref<1x1x128xf32, #tpu.memory_space<vmem>>, vector<1x1x128xf32>,
    return
  }
  func.func @transform_0(%arg0: i32, %arg1: i32) -> (i32, i32) {
    %c0_i32 = arith.constant 0 : i32
    %c0_i32_0 = arith.constant 0 : i32
    return %arg0, %c0_i32 : i32, i32
  }
  func.func @transform_1(%arg0: i32, %arg1: i32) -> (i32, i32) {
    %c0_i32 = arith.constant 0 : i32
    %c0_i32_0 = arith.constant 0 : i32
    return %c0_i32, %arg1 : i32, i32
  }
  func.func @transform_2(%arg0: i32, %arg1: i32) -> (i32, i32) {
    %c0_i32 = arith.constant 0 : i32
    %c0_i32_0 = arith.constant 0 : i32
    return %arg0, %c0_i32 : i32, i32
  }
  func.func @transform_3(%arg0: i32, %arg1: i32) -> (i32, i32) {
    %c0_i32 = arith.constant 0 : i32
    %c0_i32_0 = arith.constant 0 : i32
    return %c0_i32, %arg1 : i32, i32
  }
  func.func @transform_4(%arg0: i32, %arg1: i32) -> (i32, i32) {
    %c0_i32 = arith.constant 0 : i32
    %c0_i32_0 = arith.constant 0 : i32
    return %arg0, %c0_i32 : i32, i32
  }
  func.func @transform_5(%arg0: i32, %arg1: i32) -> (i32, i32) {
    %c0_i32 = arith.constant 0 : i32
    %c0_i32_0 = arith.constant 0 : i32
    return %c0_i32, %arg1 : i32, i32
  }
  func.func @transform_6(%arg0: i32, %arg1: i32) -> (i32, i32, i32) {
    %c0_i32 = arith.constant 0 : i32
    %c0_i32_0 = arith.constant 0 : i32
    return %arg0, %c0_i32, %arg1 : i32, i32, i32
  }
}

</mosaic_0001>

<bundles_post_ra>
// kernel: tpu_custom_call.1
= control target key start
LH: loop header
LB: loop body
LE: loop exit
PB: predicated region body
PF: predicated region fallthrough
CT: control target
= control target key end

     0   :  { %11 = vsyncpa [#allocation3], 0  ;;  %s392_s0 = inlined_call_operand.vmem [shape: f32[8,128], index: 0, kind: input, shape index: {}]   ;;  %s393_s1 = inlined_call_operand.hbm [shape: f32[128,128], index: 1, kind: input, shape index: {}]   ;;  %s394_s2 = inlined_call_operand.vmem [shape: f32[8,1], index: 2, kind: input, shape index: {}]   ;;  %s395_s3 = inlined_call_operand.vmem [shape: f32[1,128], index: 3, kind: input, shape index: {}]   ;;  %s396_s4 = inlined_call_operand.vmem [shape: s32[8,1], index: 4, kind: input, shape index: {}]   ;;  %s397_s5 = inlined_call_operand.vmem [shape: s32[1,128], index: 5, kind: input, shape index: {}]   ;;  %s398_s6 = inlined_call_operand.hbm [shape: f32[1,1,128], index: 6, kind: output, shape index: {}]  }
   0x1   :  { %12 = vsyncpa [#allocation4], 0  ;;  %s310_s21 = smov [#allocation2]   ;;  %s262_s25 = scalar_lea.hbm %s393_s1, 2048 }
   0x2   :  { %s20_s22 = sshll.u32 %s310_s21, 4  ;;  %p263_p0 = scmp.ne.s32.totalorder %s393_s1, %s262_s25  ;;  %s21_s22 = int_to_ptr.vmem [resolvable:$true] %s20_s22 }
   0x3   :  { %p266_p1 = scmp.lt.u32.totalorder %s262_s25, %s393_s1 }
   0x5   :  { %p268_p2 = pnand %p266_p1, %p263_p0 }
   0x7   :  { %271 = shalt.err (!%p268_p2)
}
   0x8   :  { %s272_s30 = scalar_lea.vmem %s21_s22, 2048  ;;  %p277_p4 = scmp.lt.s32.totalorder %s21_s22, %s21_s22 }
   0x9   :  { %p273_p3 = scmp.ne.s32.totalorder %s21_s22, %s272_s30  ;;  %p278_p5 = scmp.lt.s32.totalorder %s272_s30, %s272_s30 }
   0xb   :  { %p279_p6 = por %p278_p5, %p277_p4 }
   0xd   :  { %p280_p7 = pnand %p279_p6, %p273_p3 }
   0xf   :  { %283 = shalt.err (!%p280_p7)
}
  0x10   :  { %s311_s7 = smov 128   ;;  %s312_s8 = smov 8  }
  0x11   :  { %26 = dma.hbm_to_vmem [thread:$0]  %s393_s1, 2048, %s21_s22, [#allocation3], %s311_s7, %s311_s7, %s312_s8  }
  0x12   :  { %306 = dma.done.wait [#allocation3], 2048  }
  0x13   :  { %307 = vsyncadd [#allocation3], 4294965248  ;;  %v313_v0 = vmov 0.0|0.0   ;;  %vm314_vm0 = vmmov 0   ;;  %v315_v1 = vmov 0.0   ;;  %v316_v2 = vmov 0  }
  0x14   :  { %229 = vmatprep.subr.bf16.mxu0 %v313_v0  ;;  %226 = vmatprep.mubr.msk.f32.mxu0 %vm314_vm0, %v315_v1  ;;  %v39_v3 = vld [vmem:[#allocation2] sm:$0xff]  ;;  %v40_v4 = vld [vmem:[#allocation2 + $0x8] sm:$0xff]  ;;  %v41_v5 = vld [vmem:[#allocation2 + $0x10] sm:$0xff] }
  0x15   :  { %261 = vset.pattern.permute.xlu0 %v316_v2  ;;  %v230_v6 = vpack.c.bf16 %v40_v4, %v39_v3  ;;  %v42_v7 = vld [vmem:[#allocation2 + $0x18] sm:$0xff]  ;;  %v43_v9 = vld [vmem:[#allocation2 + $0x20] sm:$0xff]  ;;  %v44_v10 = vld [vmem:[#allocation2 + $0x28] sm:$0xff] }
  0x16   :  { %v233_v8 = vpack.c.bf16 %v42_v7, %v41_v5  ;;  %v125_v11 = vld [vmem:[%s394_s2] sm:$0xff]  ;;  %v236_v12 = vpack.c.bf16 %v44_v10, %v43_v9  ;;  %v45_v14 = vld [vmem:[#allocation2 + $0x30] sm:$0xff]  ;;  %v46_v15 = vld [vmem:[#allocation2 + $0x38] sm:$0xff] }
  0x17   :  { %231 = vmatpush3.bf16.msra.mxu0 %v230_v6  ;;  %131 = vperm.xlu0 %261, %v125_v11   ;;  %v127_v13 = vld [vmem:[%s396_s4] sm:$0xff]  ;;  %v239_v16 = vpack.c.bf16 %v46_v15, %v45_v14  ;;  %v48_v18 = vld [vmem:[#allocation2 + $0x48] sm:$0xff]  ;;  %v49_v20 = vld [vmem:[#allocation2 + $0x50] sm:$0xff] }
  0x18   :  { %232 = vmatprep.subr.bf16.mxu0 %v313_v0  ;;  %v47_v17 = vld [vmem:[#allocation2 + $0x40] sm:$0xff]  ;;  %v50_v21 = vld [vmem:[#allocation2 + $0x58] sm:$0xff]  ;;  %v52_v24 = vld [vmem:[#allocation2 + $0x68] sm:$0xff] }
  0x19   :  { %v242_v19 = vpack.c.bf16 %v48_v18, %v47_v17  ;;  %v245_v22 = vpack.c.bf16 %v50_v21, %v49_v20  ;;  %v51_v23 = vld [vmem:[#allocation2 + $0x60] sm:$0xff]  ;;  %v53_v26 = vld [vmem:[#allocation2 + $0x70] sm:$0xff]  ;;  %v54_v27 = vld [vmem:[#allocation2 + $0x78] sm:$0xff] }
  0x1a   :  { %v248_v25 = vpack.c.bf16 %v52_v24, %v51_v23  ;;  %v251_v28 = vpack.c.bf16 %v54_v27, %v53_v26  ;;  %v38_v29 = vld [vmem:[%s392_s0] sm:$0xff]  ;;  %s317_s0 = smov [#allocation5]  }
  0x1b   :  { %234 = vmatpush3.bf16.msra.mxu0 %v233_v8  ;;  %143 = vperm.xlu0 %261, %v127_v13   ;;  %v175_v32 = vld [vmem:[%s395_s3] ss:$0 sm:$0xff]  ;;  %s166_s18 = sshll.u32 %s317_s0, 4  ;;  %s167_s18 = int_to_ptr.vmem [resolvable:$true] %s166_s18 }
  0x1c   :  { %235 = vmatprep.subr.bf16.mxu0 %v313_v0  ;;  %v176_v36 = vld [vmem:[%s397_s5] ss:$0 sm:$0xff]  ;;  %s284_s3 = scalar_lea.vmem %s167_s18, 16  ;;  %s288_s19 = scalar_lea.vmem %s167_s18, 32 }
  0x1d   :  { %p285_p8 = scmp.ne.s32.totalorder %s167_s18, %s284_s3  ;;  %p289_p9 = scmp.lt.s32.totalorder %s167_s18, %s167_s18 }
  0x1e   :  { %p290_p10 = scmp.lt.s32.totalorder %s288_s19, %s284_s3 }
  0x1f   :  { %237 = vmatpush3.bf16.msra.mxu0 %v236_v12 }
  0x20   :  { %238 = vmatprep.subr.bf16.mxu0 %v313_v0  ;;  %p291_p11 = por %p290_p10, %p289_p9 }
  0x22   :  { %p292_p12 = pnand %p291_p11, %p285_p8 }
  0x23   :  { %240 = vmatpush3.bf16.msra.mxu0 %v239_v16 }
  0x24   :  { %241 = vmatprep.subr.bf16.mxu0 %v313_v0 }
  0x27   :  { %243 = vmatpush3.bf16.msra.mxu0 %v242_v19 }
  0x28   :  { %244 = vmatprep.subr.bf16.mxu0 %v313_v0 }
  0x2b   :  { %246 = vmatpush3.bf16.msra.mxu0 %v245_v22 }
  0x2c   :  { %247 = vmatprep.subr.bf16.mxu0 %v313_v0 }
  0x2f   :  { %249 = vmatpush3.bf16.msra.mxu0 %v248_v25 }
  0x30   :  { %250 = vmatprep.subr.bf16.mxu0 %v313_v0 }
  0x33   :  { %252 = vmatpush3.bf16.msra.mxu0 %v251_v28 }
  0x36   :  { %227 = vmatmul.mubr.f32.vlgmr.msra.gmra.mrb[0].mxu0 %v38_v29 }
  0x96   :  { %v132_v30 = vpop.permute.xlu0 %131 }
  0x9a   :  { %v144_v37 = vpop.permute.xlu0 %143 }
  0x9b   :  { %vm149_vm1 = vcmp.eq.s32.totalorder %v144_v37, %v176_v36 }
 0x109   :  { %v121_v31 = vpop.f32.mrb[0].mxu0 }
 0x10a   :  { %v134_v33 = vmul.f32 %v132_v30, %v121_v31  ;;  %v228_v34 = vpop.f32.mrb[1].mxu0 }
 0x10c   :  { %v141_v35 = vmul.f32 %v175_v32, %v134_v33 }
 0x10e   :  { %v150_v38 = vsub.f32 1.0, %v141_v35 }
 0x110   :  { %v151_v39 = vmax.f32 %v150_v38, 0.0 }
 0x112   :  { %v152_v40 = vsel %vm149_vm1, %v151_v39, %v141_v35 }
 0x113   :  { %v153_v41 = vrot.slane %v152_v40, 4 }
 0x115   :  { %v154_v42 = vadd.f32 %v153_v41, %v152_v40 }
 0x117   :  { %v155_v43 = vrot.slane %v154_v42, 2 }
 0x119   :  { %v156_v44 = vadd.f32 %v155_v43, %v154_v42 }
 0x11b   :  { %v157_v45 = vrot.slane %v156_v44, 1 }
 0x11d   :  { %v158_v46 = vadd.f32 %v157_v45, %v156_v44 }
 0x11f   :  { %159 = vst [vmem:[#allocation5] sm:$0x1] %v158_v46 }
 0x120   :  { %295 = shalt.err (!%p292_p12)
}
 0x121   :  { %s296_s21 = scalar_lea.hbm %s398_s6, 16 }
 0x122   :  { %p297_p13 = scmp.ne.s32.totalorder %s398_s6, %s296_s21  ;;  %p300_p0 = scmp.lt.u32.totalorder %s296_s21, %s398_s6 }
 0x124   :  { %p302_p1 = pnand %p300_p0, %p297_p13 }
 0x126   :  { %305 = shalt.err (!%p302_p1)
}
 0x127   :  { %169 = dma.vmem_to_hbm [thread:$0]  %s167_s18, 16, %s398_s6, [#allocation4]  }
 0x128   :  { %308 = dma.done.wait [#allocation4], 16  }
 0x129   :  { %309 = vsyncadd [#allocation4], 4294967280 }
 0x12a   :  { %173 = vsyncpa [#allocation3], 1 }
 0x12b   :  { %174 = vsyncpa [#allocation4], 1 }

</bundles_post_ra>
